<compile_context>
chip_gen: v6e
topology: v6e:2x2x1
jax: 0.10.0
libtpu: 0.0.40
codegen_flags: <defaults>
</compile_context>

<pallas_src>
import jax
import jax.numpy as jnp
from jax.experimental import pallas as pl
from jax.experimental.pallas import tpu as pltpu

_LANE = 128
_TARGET_BLOCK_BYTES = 2 * 1024 * 1024  # 2 MiB / buffer; 2 bufs x (in+out) = 8 MiB live
_MIN_GRID_STEPS = 8                    # >= 8 steps -> each v7x TC gets >= 4 pipelined steps


def _sublane_mult(dtype) -> int:
    """Row-count multiple so blocks stay aligned to packed sublanes."""
    itemsize = jnp.dtype(dtype).itemsize
    return max(8, 32 // max(itemsize, 1))  # f32 -> 8, bf16 -> 16, int8/fp8 -> 32


def _choose_block_rows(rows: int, width: int, itemsize: int, mult: int) -> int:
    """Pick block rows: <= ~2 MiB/block (dtype-aware), aim for an even grid >= 8."""
    bytes_per_row = width * itemsize
    max_rows = max(mult, (_TARGET_BLOCK_BYTES // bytes_per_row) // mult * mult)

    if rows <= 2 * mult:
        # Genuinely tiny input: a single block covering the full row extent
        # (block dim == full array dim is always a legal block shape).
        return rows

    steps = max(_MIN_GRID_STEPS, pl.cdiv(rows, max_rows))
    if steps % 2:
        steps += 1  # even grid -> both v7x TCs get equal, pipelined work
    block_rows = ((pl.cdiv(rows, steps) + mult - 1) // mult) * mult
    block_rows = max(mult, min(block_rows, max_rows))

    # Best-effort: nudge to an even actual grid length (rounding above can
    # make it odd).  On v5e/v6e (1 TC) this is a harmless no-op.
    grid_n = pl.cdiv(rows, block_rows)
    if grid_n > 2 and grid_n % 2 == 1 and block_rows - mult >= mult:
        alt = block_rows - mult
        if pl.cdiv(rows, alt) % 2 == 0 and alt <= max_rows:
            block_rows = alt
    return block_rows


def _aglu_kernel(p_ref, x_ref, o_ref):
    # p_ref (SMEM, f32): [0]=kappa, [1]=log(lam_clamped), [2]=1/lam_clamped
    kap = p_ref[0]
    log_lam = p_ref[1]
    inv_lam = p_ref[2]

    x = x_ref[...].astype(jnp.float32)
    y = kap * x - log_lam
    # Softplus(beta=-1) with torch's threshold=20 linear region.
    sp = jnp.where(y < -20.0, y, -jnp.log1p(jnp.exp(-y)))
    o_ref[...] = jnp.exp(sp * inv_lam).astype(o_ref.dtype)


def _aglu_jnp(x, kap, log_lam, inv_lam):
    """Plain-jnp AGLU for sub-128-element tails / tiny inputs (f32 math)."""
    y = kap * x.astype(jnp.float32) - log_lam
    sp = jnp.where(y < -20.0, y, -jnp.log1p(jnp.exp(-y)))
    return jnp.exp(sp * inv_lam)


def aglu(x, lambd, kappa):
    """AGLU activation. x: any shape/dtype. lambd/kappa: shape (1,) params."""
    orig_shape = x.shape
    orig_dtype = x.dtype
    itemsize = jnp.dtype(orig_dtype).itemsize

    # Scalar precompute (cheap, outside the kernel): clamp, log, reciprocal.
    lam = jnp.maximum(lambd.reshape(()).astype(jnp.float32), 1e-4)
    kap = kappa.reshape(()).astype(jnp.float32)
    log_lam = jnp.log(lam)
    inv_lam = 1.0 / lam
    params = jnp.stack([kap, log_lam, inv_lam])  # (3,) f32 -> SMEM

    flat = x.reshape(-1)  # free (contiguous) reshape
    n = flat.shape[0]
    n_main = (n // _LANE) * _LANE
    tail = n - n_main

    if n_main == 0:
        # Whole tensor is smaller than one lane row: skip the kernel entirely.
        out = _aglu_jnp(flat, kap, log_lam, inv_lam).astype(orig_dtype)
        return out.reshape(orig_shape)

    main = flat if tail == 0 else flat[:n_main]  # 128-aligned prefix (no pad)

    # Widest lane-dense slab whose width divides the aligned element count.
    width = _LANE
    for w in (2048, 1024, 512, 256):
        if n_main % w == 0:
            width = w
            break
    rows = n_main // width
    x2 = main.reshape(rows, width)

    mult = _sublane_mult(orig_dtype)
    block_rows = _choose_block_rows(rows, width, itemsize, mult)
    grid = (pl.cdiv(rows, block_rows),)  # ragged last block handled by Pallas

    cost = pl.CostEstimate(
        flops=3 * n_main,
        transcendentals=3 * n_main,
        bytes_accessed=2 * n_main * itemsize,
    )

    out2 = pl.pallas_call(
        _aglu_kernel,
        out_shape=jax.ShapeDtypeStruct((rows, width), orig_dtype),
        grid=grid,
        in_specs=[
            pl.BlockSpec(memory_space=pltpu.MemorySpace.SMEM),
            pl.BlockSpec((block_rows, width), lambda i: (i, 0)),
        ],
        out_specs=pl.BlockSpec((block_rows, width), lambda i: (i, 0)),
        compiler_params=pltpu.CompilerParams(
            dimension_semantics=("parallel",)
        ),
        cost_estimate=cost,
    )(params, x2)

    if tail == 0:
        return out2.reshape(orig_shape)

    # <128-element tail: tiny plain-jnp evaluation, then stitch back together.
    tail_out = _aglu_jnp(flat[n_main:], kap, log_lam, inv_lam).astype(orig_dtype)
    return jnp.concatenate([out2.reshape(-1), tail_out]).reshape(orig_shape)


def _aglu_reference(x, lambd, kappa):
    lam = jnp.maximum(lambd, 1e-4)
    y = kappa * x - jnp.log(lam)
    sp = jnp.where(y < -20.0, y, -jnp.log1p(jnp.exp(-y)))
    return jnp.exp(sp / lam)


if __name__ == "__main__":
    key = jax.random.PRNGKey(0)
    kx, kl, kk = jax.random.split(key, 3)

    # NCHW input, as in the PyTorch module's typical usage.
    x = jax.random.normal(kx, (2, 4, 16, 16), dtype=jnp.float32)

    # nn.init.uniform_ -> U[0, 1), shape (1,) each. Deterministic in-script init.
    lambd = jax.random.uniform(kl, (1,), dtype=jnp.float32)
    kappa = jax.random.uniform(kk, (1,), dtype=jnp.float32)

    out = aglu(x, lambd, kappa)
    out = jax.block_until_ready(out)

    ref = _aglu_reference(x, lambd[0], kappa[0])
    assert out.shape == x.shape
    assert out.dtype == x.dtype
    assert jnp.allclose(out, ref, rtol=1e-5, atol=1e-5)

    # Non-128-divisible total size: exercises the aligned-prefix + jnp-tail
    # path and a multi-block (even where possible) grid.
    x_big = jax.random.normal(kx, (3, 7, 33, 41), dtype=jnp.float32)
    out_big = jax.block_until_ready(aglu(x_big, lambd, kappa))
    ref_big = _aglu_reference(x_big, lambd[0], kappa[0])
    assert out_big.shape == x_big.shape
    assert jnp.allclose(out_big, ref_big, rtol=1e-5, atol=1e-5)

    print("KERNEL_OK")
</pallas_src>

<mosaic_0001>
module attributes {stable_mosaic.version = 11 : i64} {
  func.func @_aglu_kernel(%arg0: i32, %arg1: memref<3xf32, #tpu.memory_space<smem>>, %arg2: memref<1x2048xf32, #tpu.memory_space<vmem>>, %arg3: memref<1x2048xf32, #tpu.memory_space<vmem>>) attributes {dimension_semantics = [#tpu.dimension_semantics<parallel>], iteration_bounds = array<i64: 1>, scalar_prefetch = 0 : i64, scratch_operands = 0 : i64, tpu.core_type = #tpu.core_type<tc>, window_params = [{transform_indices = @transform_0, window_bounds = array<i64: 3>}, {transform_indices = @transform_1, window_bounds = array<i64: 1, 2048>}, {transform_indices = @transform_2, window_bounds = array<i64: 1, 2048>}]} {
    %c0 = arith.constant 0 : index
    %0 = memref.load %arg1[%c0] : memref<3xf32, #tpu.memory_space<smem>>
    %c1 = arith.constant 1 : index
    %1 = memref.load %arg1[%c1] : memref<3xf32, #tpu.memory_space<smem>>
    %c2 = arith.constant 2 : index
    %2 = memref.load %arg1[%c2] : memref<3xf32, #tpu.memory_space<smem>>
    %c0_0 = arith.constant 0 : index
    %c0_1 = arith.constant 0 : index
    %3 = vector.load %arg2[%c0_0, %c0_1] : memref<1x2048xf32, #tpu.memory_space<vmem>>, vector<1x2048xf32>
    %4 = vector.broadcast %0 : f32 to vector<1x2048xf32>
    %5 = arith.mulf %4, %3 : vector<1x2048xf32>
    %6 = vector.broadcast %1 : f32 to vector<1x2048xf32>
    %7 = arith.subf %5, %6 : vector<1x2048xf32>
    %cst = arith.constant -2.000000e+01 : f32
    %8 = vector.broadcast %cst : f32 to vector<1x2048xf32>
    %9 = arith.cmpf olt, %7, %8 : vector<1x2048xf32>
    %cst_2 = arith.constant 0.000000e+00 : f32
    %10 = vector.broadcast %cst_2 : f32 to vector<1x2048xf32>
    %11 = arith.subf %10, %7 : vector<1x2048xf32>
    %12 = math.exp %11 : vector<1x2048xf32>
    %13 = math.log1p %12 : vector<1x2048xf32>
    %cst_3 = arith.constant 0.000000e+00 : f32
    %14 = vector.broadcast %cst_3 : f32 to vector<1x2048xf32>
    %15 = arith.subf %14, %13 : vector<1x2048xf32>
    %16 = arith.select %9, %7, %15 : vector<1x2048xi1>, vector<1x2048xf32>
    %17 = vector.broadcast %2 : f32 to vector<1x2048xf32>
    %18 = arith.mulf %16, %17 : vector<1x2048xf32>
    %19 = math.exp %18 : vector<1x2048xf32>
    %c0_4 = arith.constant 0 : index
    %c0_5 = arith.constant 0 : index
    %20 = vector.load %arg3[%c0_4, %c0_5] : memref<1x2048xf32, #tpu.memory_space<vmem>>, vector<1x2048xf32>
    tpu.vector_store %arg3[%c0_4, %c0_5], %19 {strides = array<i32>} : memref<1x2048xf32, #tpu.memory_space<vmem>>, vector<1x2048xf32>,
    return
  }
  func.func @transform_0(%arg0: i32) -> i32 {
    %c0_i32 = arith.constant 0 : i32
    %c0_i32_0 = arith.constant 0 : i32
    return %c0_i32 : i32
  }
  func.func @transform_1(%arg0: i32) -> (i32, i32) {
    %c0_i32 = arith.constant 0 : i32
    %c0_i32_0 = arith.constant 0 : i32
    return %arg0, %c0_i32 : i32, i32
  }
  func.func @transform_2(%arg0: i32) -> (i32, i32) {
    %c0_i32 = arith.constant 0 : i32
    %c0_i32_0 = arith.constant 0 : i32
    return %arg0, %c0_i32 : i32, i32
  }
}

</mosaic_0001>

<bundles_post_ra>
// kernel: tpu_custom_call.1
= control target key start
LH: loop header
LB: loop body
LE: loop exit
PB: predicated region body
PF: predicated region fallthrough
CT: control target
= control target key end

     0   :  { %7 = vsyncpa [#allocation5], 0  ;;  %s199_s0 = inlined_call_operand.hbm [shape: f32[3], index: 0, kind: input, shape index: {}]   ;;  %s200_s1 = inlined_call_operand.hbm [shape: f32[1,2048], index: 1, kind: input, shape index: {}]   ;;  %s201_s2 = inlined_call_operand.hbm [shape: f32[1,2048], index: 2, kind: output, shape index: {}]  }
   0x1   :  { %8 = vsyncpa [#allocation3], 0 }
   0x2   :  { %9 = vsyncpa [#allocation4], 0  ;;  %s172_s9 = smov [#allocation2]   ;;  %s173_s12 = smov [#allocation6]  }
   0x3   :  { %17 = dma.hbm_to_smem %s199_s0, 16, %s172_s9, [#allocation5]  }
   0x4   :  { %s24_s13 = sshll.u32 %s173_s12, 4  ;;  %s25_s13 = int_to_ptr.vmem [resolvable:$true] %s24_s13 }
   0x5   :  { %s134_s14 = scalar_lea.vmem %s25_s13, 256  ;;  %p139_p1 = scmp.lt.s32.totalorder %s25_s13, %s25_s13 }
   0x6   :  { %p135_p0 = scmp.ne.s32.totalorder %s25_s13, %s134_s14  ;;  %p140_p2 = scmp.lt.s32.totalorder %s134_s14, %s134_s14 }
   0x8   :  { %p141_p3 = por %p140_p2, %p139_p1 }
   0xa   :  { %p142_p4 = pnand %p141_p3, %p135_p0 }
   0xc   :  { %145 = shalt.err (!%p142_p4)
}
   0xd   :  { %27 = dma.hbm_to_vmem [thread:$0]  %s200_s1, 256, %s25_s13, [#allocation3]  }
   0xe   :  { %166 = dma.done.wait [#allocation5], 16  }
   0xf   :  { %167 = vsyncadd [#allocation5], 4294967280 }
  0x10   :  { %168 = dma.done.wait [#allocation3], 256  }
  0x11   :  { %169 = vsyncadd [#allocation3], 4294967040 }
  0x12   :  { %34 = sfence }
  0x13   :  { %s35_s0 = sld [smem:[#allocation2]]  ;;  %v38_v0 = vld [vmem:[#allocation6] sm:$0xff]  ;;  %v39_v1 = vld [vmem:[#allocation6 + $0x8] sm:$0xff]  ;;  %s174_s18 = smov [#allocation7]  }
  0x14   :  { %s101_s17 = sld [smem:[#allocation2 + $0x1]]  ;;  %s91_s19 = sshll.u32 %s174_s18, 4  ;;  %s92_s19 = int_to_ptr.vmem [resolvable:$true] %s91_s19 }
  0x15   :  { %s102_s1 = sld [smem:[#allocation2 + $0x2]]  ;;  %s146_s20 = scalar_lea.vmem %s92_s19, 256 }
  0x16   :  { %p147_p5 = scmp.ne.s32.totalorder %s92_s19, %s146_s20  ;;  %p151_p6 = scmp.lt.s32.totalorder %s92_s19, %s92_s19 }
  0x17   :  { %p152_p7 = scmp.lt.s32.totalorder %s146_s20, %s146_s20 }
  0x19   :  { %v40_v2 = vstv %s35_s0  ;;  %p153_p8 = por %p152_p7, %p151_p6 }
  0x1a   :  { %v41_v3 = vmul.f32 %v40_v2, %v38_v0  ;;  %v43_v4 = vstv %s101_s17  ;;  %v42_v5 = vmul.f32 %v40_v2, %v39_v1 }
  0x1b   :  { %v76_v30 = vstv %s102_s1  ;;  %p154_p9 = pnand %p153_p8, %p147_p5 }
  0x1c   :  { %v44_v6 = vsub.f32 %v41_v3, %v43_v4  ;;  %v45_v7 = vsub.f32 %v42_v5, %v43_v4 }
  0x1e   :  { %v48_v8 = vsub.f32 0.0, %v44_v6  ;;  %v49_v9 = vsub.f32 0.0, %v45_v7  ;;  %vm46_vm2 = vcmp.lt.f32.partialorder %v44_v6, -20.0  ;;  %vm47_vm3 = vcmp.lt.f32.partialorder %v45_v7, -20.0 }
  0x20   :  { %v50_v10 = vmul.f32 1.442695, %v48_v8  ;;  %v52_v11 = vmul.f32 1.442695, %v49_v9 }
  0x22   :  { %106 = vpow2.f32 %v50_v10 }
  0x23   :  { %108 = vpow2.f32 %v52_v11 }
  0x2f   :  { %v107_v12 = vpop.eup %106 }
  0x30   :  { %v109_v13 = vpop.eup %108  ;;  %v54_v14 = vadd.f32 1.0, %v107_v12  ;;  %v57_v16 = vmul.f32 -0.5, %v107_v12  ;;  %v60_v19 = vand.u32 2147483647, %v107_v12 }
  0x31   :  { %v63_v15 = vadd.f32 1.0, %v109_v13  ;;  %v66_v17 = vmul.f32 -0.5, %v109_v13  ;;  %v69_v21 = vand.u32 2147483647, %v109_v13 }
  0x32   :  { %110 = vlog2.f32 %v54_v14  ;;  %v58_v18 = vadd.f32 1.0, %v57_v16  ;;  %vm61_vm0 = vcmp.lt.f32.partialorder %v60_v19, 0.0004427343 }
  0x33   :  { %112 = vlog2.f32 %v63_v15  ;;  %v67_v20 = vadd.f32 1.0, %v66_v17  ;;  %vm70_vm1 = vcmp.lt.f32.partialorder %v69_v21, 0.0004427343 }
  0x34   :  { %v59_v22 = vmul.f32 %v107_v12, %v58_v18 }
  0x35   :  { %v68_v24 = vmul.f32 %v109_v13, %v67_v20 }
  0x3f   :  { %v111_v23 = vpop.eup %110 }
  0x40   :  { %v113_v25 = vpop.eup %112  ;;  %v56_v26 = vmul.f32 0.6931472, %v111_v23 }
  0x41   :  { %v65_v27 = vmul.f32 0.6931472, %v113_v25 }
  0x42   :  { %v62_v28 = vsel %vm61_vm0, %v59_v22, %v56_v26 }
  0x43   :  { %v72_v29 = vsub.f32 0.0, %v62_v28  ;;  %v71_v31 = vsel %vm70_vm1, %v68_v24, %v65_v27 }
  0x44   :  { %v73_v32 = vsub.f32 0.0, %v71_v31 }
  0x45   :  { %v74_v33 = vsel %vm46_vm2, %v44_v6, %v72_v29 }
  0x46   :  { %v77_v34 = vmul.f32 %v76_v30, %v74_v33  ;;  %v75_v35 = vsel %vm47_vm3, %v45_v7, %v73_v32 }
  0x47   :  { %v78_v36 = vmul.f32 %v76_v30, %v75_v35 }
  0x48   :  { %v79_v37 = vmul.f32 1.442695, %v77_v34 }
  0x49   :  { %v81_v38 = vmul.f32 1.442695, %v78_v36 }
  0x4a   :  { %114 = vpow2.f32 %v79_v37 }
  0x4b   :  { %116 = vpow2.f32 %v81_v38 }
  0x57   :  { %v115_v39 = vpop.eup %114 }
  0x58   :  { %v117_v40 = vpop.eup %116  ;;  %83 = vst [vmem:[#allocation7] sm:$0xff] %v115_v39 }
  0x59   :  { %84 = vst [vmem:[#allocation7 + $0x8] sm:$0xff] %v117_v40 }
  0x5a   :  { %157 = shalt.err (!%p154_p9)
}
  0x5b   :  { %94 = dma.vmem_to_hbm [thread:$0]  %s92_s19, 256, %s201_s2, [#allocation4]  }
  0x5c   :  { %170 = dma.done.wait [#allocation4], 256  }
  0x5d   :  { %171 = vsyncadd [#allocation4], 4294967040 }
  0x5e   :  { %98 = vsyncpa [#allocation3], 1 }
  0x5f   :  { %99 = vsyncpa [#allocation4], 1 }
  0x60   :  { %100 = vsyncpa [#allocation5], 1 }

</bundles_post_ra>
